<compile_context>
chip_gen: v7x
topology: tpu7x:2x2x1
jax: 0.10.0
libtpu: 0.0.40
codegen_flags: <defaults>
</compile_context>

<pallas_src>
import functools
import math

import jax
import jax.numpy as jnp
from jax.experimental import pallas as pl
from jax.experimental.pallas import tpu as pltpu

# (in_features, out_features) for each of the 8 Linear layers
LAYER_DIMS = [
    (28 * 28, 128), (128, 64), (64, 12), (12, 3),      # encoder
    (3, 12), (12, 64), (64, 128), (128, 28 * 28),      # decoder
]


def _round_up(x, m):
    return ((x + m - 1) // m) * m


def ae_mnist_kernel(x_ref,
                    w0, b0, w1, b1, w2, b2, w34, b34,
                    w5, b5, w6, b6, w7, b7,
                    o_ref, *, compute_dtype):
    """Full autoencoder forward pass on one (TB, 784) batch tile.

    All weights (<1 MiB total) are VMEM-resident; the 12->3 / 3->12 pair has
    been pre-fused into a single 12->12 layer (w34, b34) outside the kernel
    (exact: no nonlinearity between those layers).
    """
    h = x_ref[...]

    def linear(h, w_ref, b_ref):
        # MXU matmul (optionally bf16 operands), f32 accumulation; bias add
        # and activations stay f32 (v5e VPU/EUP have no bf16).
        return (jnp.dot(h.astype(compute_dtype), w_ref[...],
                        preferred_element_type=jnp.float32)
                + b_ref[...])

    # ---- encoder ----
    h = jnp.maximum(linear(h, w0, b0), 0.0)    # 784 -> 128, ReLU
    h = jnp.maximum(linear(h, w1, b1), 0.0)    # 128 -> 64,  ReLU
    h = jnp.maximum(linear(h, w2, b2), 0.0)    # 64  -> 12,  ReLU
    # ---- fused bottleneck: (12 -> 3, identity) then (3 -> 12, ReLU) ----
    h = jnp.maximum(linear(h, w34, b34), 0.0)  # 12  -> 12,  ReLU
    # ---- decoder ----
    h = jnp.maximum(linear(h, w5, b5), 0.0)    # 12  -> 64,  ReLU
    h = jnp.maximum(linear(h, w6, b6), 0.0)    # 64  -> 128, ReLU
    h = jnp.tanh(linear(h, w7, b7))            # 128 -> 784, Tanh

    o_ref[...] = h.astype(o_ref.dtype)


def init_params(key):
    """Deterministic init mimicking PyTorch nn.Linear default U(-1/sqrt(fan_in), +)."""
    params = []
    for (fan_in, fan_out) in LAYER_DIMS:
        key, kw, kb = jax.random.split(key, 3)
        bound = 1.0 / math.sqrt(fan_in)
        w = jax.random.uniform(kw, (fan_in, fan_out), jnp.float32, -bound, bound)
        b = jax.random.uniform(kb, (1, fan_out), jnp.float32, -bound, bound)
        params += [w, b]
    return params


@functools.partial(jax.jit, static_argnames=("block_batch", "use_bf16"))
def ae_mnist_forward(x, params, *, block_batch=2048, use_bf16=False):
    B, F = x.shape  # F == 784
    (w0, b0, w1, b1, w2, b2, w3, b3,
     w4, b4, w5, b5, w6, b6, w7, b7) = params

    # Fuse the activation-free 12->3 layer into the following 3->12 layer
    # (exact; no nonlinearity in between). Amortized/fused under jit.
    w34 = w3 @ w4                   # (12, 12)
    b34 = b3 @ w4 + b4              # (1, 12)

    compute_dtype = jnp.bfloat16 if use_bf16 else jnp.float32
    weights = [w0, w1, w2, w34, w5, w6, w7]
    if use_bf16:
        # Pre-cast weights once (halves weight VMEM/DMA, no per-step casts).
        weights = [w.astype(jnp.bfloat16) for w in weights]
    w0, w1, w2, w34, w5, w6, w7 = weights

    # Batch tile: big enough to feed the MXU / amortize per-step overhead.
    # No batch padding: grid = cdiv(B, TB); Pallas masks the partial block.
    TB = min(block_batch, _round_up(B, 8))
    nb = pl.cdiv(B, TB)

    kern_params = [w0, b0, w1, b1, w2, b2, w34, b34, w5, b5, w6, b6, w7, b7]

    # x / out: tiled over the batch grid, full 784-wide rows (last dim equal
    # to the full array dim is legal). Weights/biases: full-array blocks with
    # constant index_maps -> DMA'd once, VMEM-resident across the grid.
    x_spec = pl.BlockSpec((TB, F), lambda i: (i, 0))
    out_spec = pl.BlockSpec((TB, F), lambda i: (i, 0))
    param_specs = [pl.BlockSpec(p.shape, lambda i: (0, 0)) for p in kern_params]

    kernel = functools.partial(ae_mnist_kernel, compute_dtype=compute_dtype)

    out = pl.pallas_call(
        kernel,
        out_shape=jax.ShapeDtypeStruct((B, F), jnp.float32),
        grid_spec=pltpu.PrefetchScalarGridSpec(
            num_scalar_prefetch=0,
            grid=(nb,),
            in_specs=[x_spec] + param_specs,
            out_specs=out_spec,
        ),
        compiler_params=pltpu.CompilerParams(
            dimension_semantics=("parallel",),   # shard batch tiles across TCs (v7x)
            vmem_limit_bytes=48 << 20,           # under v7x's 64 MiB, ample on v5e/v6e
        ),
    )(x, *kern_params)

    return out


def ae_mnist_reference(x, params):
    h = x
    acts = ["relu", "relu", "relu", "none", "relu", "relu", "relu", "tanh"]
    for i, act in enumerate(acts):
        w, b = params[2 * i], params[2 * i + 1]
        h = h @ w + b
        if act == "relu":
            h = jnp.maximum(h, 0.0)
        elif act == "tanh":
            h = jnp.tanh(h)
    return h


if __name__ == "__main__":
    key = jax.random.PRNGKey(0)
    key, kx1, kx2 = jax.random.split(key, 3)
    params = init_params(key)

    # --- small demo batch (spec-consistent) ---
    B = 2
    x = jax.random.normal(kx1, (B, 28 * 28), jnp.float32)
    out = jax.block_until_ready(ae_mnist_forward(x, params))
    ref = ae_mnist_reference(x, params)
    assert out.shape == (B, 28 * 28)
    assert jnp.allclose(out, ref, atol=1e-5, rtol=1e-5), "f32 mismatch vs reference"

    # --- larger batch: exercises multiple grid steps + a partial final tile ---
    B2 = 1040  # with block_batch=512 -> TB=512, grid=cdiv(1040,512)=3 (last partial)
    x2 = jax.random.normal(kx2, (B2, 28 * 28), jnp.float32)
    out2 = jax.block_until_ready(ae_mnist_forward(x2, params, block_batch=512))
    ref2 = ae_mnist_reference(x2, params)
    assert out2.shape == (B2, 28 * 28)
    assert jnp.allclose(out2, ref2, atol=1e-5, rtol=1e-5), "tiled f32 mismatch"

    # --- bf16 MXU operands (pre-cast weights, f32 accumulate): looser tolerance ---
    out_bf16 = jax.block_until_ready(
        ae_mnist_forward(x2, params, block_batch=512, use_bf16=True))
    assert jnp.allclose(out_bf16, ref2, atol=2e-2, rtol=2e-2), "bf16 mismatch"

    print("KERNEL_OK")
</pallas_src>

<mosaic_0001>
module attributes {stable_mosaic.version = 11 : i64} {
  func.func @ae_mnist_kernel(%arg0: i32, %arg1: memref<8x784xf32, #tpu.memory_space<vmem>>, %arg2: memref<784x128xf32, #tpu.memory_space<vmem>>, %arg3: memref<1x128xf32, #tpu.memory_space<vmem>>, %arg4: memref<128x64xf32, #tpu.memory_space<vmem>>, %arg5: memref<1x64xf32, #tpu.memory_space<vmem>>, %arg6: memref<64x12xf32, #tpu.memory_space<vmem>>, %arg7: memref<1x12xf32, #tpu.memory_space<vmem>>, %arg8: memref<12x12xf32, #tpu.memory_space<vmem>>, %arg9: memref<1x12xf32, #tpu.memory_space<vmem>>, %arg10: memref<12x64xf32, #tpu.memory_space<vmem>>, %arg11: memref<1x64xf32, #tpu.memory_space<vmem>>, %arg12: memref<64x128xf32, #tpu.memory_space<vmem>>, %arg13: memref<1x128xf32, #tpu.memory_space<vmem>>, %arg14: memref<128x784xf32, #tpu.memory_space<vmem>>, %arg15: memref<1x784xf32, #tpu.memory_space<vmem>>, %arg16: memref<8x784xf32, #tpu.memory_space<vmem>>) attributes {dimension_semantics = [#tpu.dimension_semantics<parallel>], iteration_bounds = array<i64: 1>, scalar_prefetch = 0 : i64, scratch_operands = 0 : i64, tpu.core_type = #tpu.core_type<tc>, window_params = [{transform_indices = @transform_0, window_bounds = array<i64: 8, 784>}, {pipeline_mode = #tpu.pipeline_mode<synchronous>, transform_indices = @transform_1, window_bounds = array<i64: 784, 128>}, {pipeline_mode = #tpu.pipeline_mode<synchronous>, transform_indices = @transform_2, window_bounds = array<i64: 1, 128>}, {pipeline_mode = #tpu.pipeline_mode<synchronous>, transform_indices = @transform_3, window_bounds = array<i64: 128, 64>}, {pipeline_mode = #tpu.pipeline_mode<synchronous>, transform_indices = @transform_4, window_bounds = array<i64: 1, 64>}, {pipeline_mode = #tpu.pipeline_mode<synchronous>, transform_indices = @transform_5, window_bounds = array<i64: 64, 12>}, {pipeline_mode = #tpu.pipeline_mode<synchronous>, transform_indices = @transform_6, window_bounds = array<i64: 1, 12>}, {pipeline_mode = #tpu.pipeline_mode<synchronous>, transform_indices = @transform_7, window_bounds = array<i64: 12, 12>}, {pipeline_mode = #tpu.pipeline_mode<synchronous>, transform_indices = @transform_8, window_bounds = array<i64: 1, 12>}, {pipeline_mode = #tpu.pipeline_mode<synchronous>, transform_indices = @transform_9, window_bounds = array<i64: 12, 64>}, {pipeline_mode = #tpu.pipeline_mode<synchronous>, transform_indices = @transform_10, window_bounds = array<i64: 1, 64>}, {pipeline_mode = #tpu.pipeline_mode<synchronous>, transform_indices = @transform_11, window_bounds = array<i64: 64, 128>}, {pipeline_mode = #tpu.pipeline_mode<synchronous>, transform_indices = @transform_12, window_bounds = array<i64: 1, 128>}, {pipeline_mode = #tpu.pipeline_mode<synchronous>, transform_indices = @transform_13, window_bounds = array<i64: 128, 784>}, {pipeline_mode = #tpu.pipeline_mode<synchronous>, transform_indices = @transform_14, window_bounds = array<i64: 1, 784>}, {transform_indices = @transform_15, window_bounds = array<i64: 8, 784>}]} {
    %c0 = arith.constant 0 : index
    %c0_0 = arith.constant 0 : index
    %0 = vector.load %arg1[%c0, %c0_0] : memref<8x784xf32, #tpu.memory_space<vmem>>, vector<8x784xf32>
    %c0_1 = arith.constant 0 : index
    %c0_2 = arith.constant 0 : index
    %1 = vector.load %arg2[%c0_1, %c0_2] : memref<784x128xf32, #tpu.memory_space<vmem>>, vector<784x128xf32>
    %cst = arith.constant dense<0.000000e+00> : vector<8x128xf32>
    %2 = tpu.matmul %0, %1, %cst {dimension_numbers = #tpu.dot_dimension_numbers<[1], [0], [0], [1], [0, 0, 1, 1], [], []>} : vector<8x784xf32>, vector<784x128xf32>, vector<8x128xf32> -> vector<8x128xf32>
    %c0_3 = arith.constant 0 : index
    %c0_4 = arith.constant 0 : index
    %3 = vector.load %arg3[%c0_3, %c0_4] : memref<1x128xf32, #tpu.memory_space<vmem>>, vector<1x128xf32>
    %4 = vector.broadcast %3 : vector<1x128xf32> to vector<8x128xf32>
    %5 = arith.addf %2, %4 : vector<8x128xf32>
    %cst_5 = arith.constant 0.000000e+00 : f32
    %6 = vector.broadcast %cst_5 : f32 to vector<8x128xf32>
    %7 = arith.maximumf %5, %6 : vector<8x128xf32>
    %c0_6 = arith.constant 0 : index
    %c0_7 = arith.constant 0 : index
    %8 = vector.load %arg4[%c0_6, %c0_7] : memref<128x64xf32, #tpu.memory_space<vmem>>, vector<128x64xf32>
    %cst_8 = arith.constant dense<0.000000e+00> : vector<8x64xf32>
    %9 = tpu.matmul %7, %8, %cst_8 {dimension_numbers = #tpu.dot_dimension_numbers<[1], [0], [0], [1], [0, 0, 1, 1], [], []>} : vector<8x128xf32>, vector<128x64xf32>, vector<8x64xf32> -> vector<8x64xf32>
    %c0_9 = arith.constant 0 : index
    %c0_10 = arith.constant 0 : index
    %10 = vector.load %arg5[%c0_9, %c0_10] : memref<1x64xf32, #tpu.memory_space<vmem>>, vector<1x64xf32>
    %11 = vector.broadcast %10 : vector<1x64xf32> to vector<8x64xf32>
    %12 = arith.addf %9, %11 : vector<8x64xf32>
    %cst_11 = arith.constant 0.000000e+00 : f32
    %13 = vector.broadcast %cst_11 : f32 to vector<8x64xf32>
    %14 = arith.maximumf %12, %13 : vector<8x64xf32>
    %c0_12 = arith.constant 0 : index
    %c0_13 = arith.constant 0 : index
    %15 = vector.load %arg6[%c0_12, %c0_13] : memref<64x12xf32, #tpu.memory_space<vmem>>, vector<64x12xf32>
    %cst_14 = arith.constant dense<0.000000e+00> : vector<8x12xf32>
    %16 = tpu.matmul %14, %15, %cst_14 {dimension_numbers = #tpu.dot_dimension_numbers<[1], [0], [0], [1], [0, 0, 1, 1], [], []>} : vector<8x64xf32>, vector<64x12xf32>, vector<8x12xf32> -> vector<8x12xf32>
    %c0_15 = arith.constant 0 : index
    %c0_16 = arith.constant 0 : index
    %17 = vector.load %arg7[%c0_15, %c0_16] : memref<1x12xf32, #tpu.memory_space<vmem>>, vector<1x12xf32>
    %18 = vector.broadcast %17 : vector<1x12xf32> to vector<8x12xf32>
    %19 = arith.addf %16, %18 : vector<8x12xf32>
    %cst_17 = arith.constant 0.000000e+00 : f32
    %20 = vector.broadcast %cst_17 : f32 to vector<8x12xf32>
    %21 = arith.maximumf %19, %20 : vector<8x12xf32>
    %c0_18 = arith.constant 0 : index
    %c0_19 = arith.constant 0 : index
    %22 = vector.load %arg8[%c0_18, %c0_19] : memref<12x12xf32, #tpu.memory_space<vmem>>, vector<12x12xf32>
    %cst_20 = arith.constant dense<0.000000e+00> : vector<8x12xf32>
    %23 = tpu.matmul %21, %22, %cst_20 {dimension_numbers = #tpu.dot_dimension_numbers<[1], [0], [0], [1], [0, 0, 1, 1], [], []>} : vector<8x12xf32>, vector<12x12xf32>, vector<8x12xf32> -> vector<8x12xf32>
    %c0_21 = arith.constant 0 : index
    %c0_22 = arith.constant 0 : index
    %24 = vector.load %arg9[%c0_21, %c0_22] : memref<1x12xf32, #tpu.memory_space<vmem>>, vector<1x12xf32>
    %25 = vector.broadcast %24 : vector<1x12xf32> to vector<8x12xf32>
    %26 = arith.addf %23, %25 : vector<8x12xf32>
    %cst_23 = arith.constant 0.000000e+00 : f32
    %27 = vector.broadcast %cst_23 : f32 to vector<8x12xf32>
    %28 = arith.maximumf %26, %27 : vector<8x12xf32>
    %c0_24 = arith.constant 0 : index
    %c0_25 = arith.constant 0 : index
    %29 = vector.load %arg10[%c0_24, %c0_25] : memref<12x64xf32, #tpu.memory_space<vmem>>, vector<12x64xf32>
    %cst_26 = arith.constant dense<0.000000e+00> : vector<8x64xf32>
    %30 = tpu.matmul %28, %29, %cst_26 {dimension_numbers = #tpu.dot_dimension_numbers<[1], [0], [0], [1], [0, 0, 1, 1], [], []>} : vector<8x12xf32>, vector<12x64xf32>, vector<8x64xf32> -> vector<8x64xf32>
    %c0_27 = arith.constant 0 : index
    %c0_28 = arith.constant 0 : index
    %31 = vector.load %arg11[%c0_27, %c0_28] : memref<1x64xf32, #tpu.memory_space<vmem>>, vector<1x64xf32>
    %32 = vector.broadcast %31 : vector<1x64xf32> to vector<8x64xf32>
    %33 = arith.addf %30, %32 : vector<8x64xf32>
    %cst_29 = arith.constant 0.000000e+00 : f32
    %34 = vector.broadcast %cst_29 : f32 to vector<8x64xf32>
    %35 = arith.maximumf %33, %34 : vector<8x64xf32>
    %c0_30 = arith.constant 0 : index
    %c0_31 = arith.constant 0 : index
    %36 = vector.load %arg12[%c0_30, %c0_31] : memref<64x128xf32, #tpu.memory_space<vmem>>, vector<64x128xf32>
    %cst_32 = arith.constant dense<0.000000e+00> : vector<8x128xf32>
    %37 = tpu.matmul %35, %36, %cst_32 {dimension_numbers = #tpu.dot_dimension_numbers<[1], [0], [0], [1], [0, 0, 1, 1], [], []>} : vector<8x64xf32>, vector<64x128xf32>, vector<8x128xf32> -> vector<8x128xf32>
    %c0_33 = arith.constant 0 : index
    %c0_34 = arith.constant 0 : index
    %38 = vector.load %arg13[%c0_33, %c0_34] : memref<1x128xf32, #tpu.memory_space<vmem>>, vector<1x128xf32>
    %39 = vector.broadcast %38 : vector<1x128xf32> to vector<8x128xf32>
    %40 = arith.addf %37, %39 : vector<8x128xf32>
    %cst_35 = arith.constant 0.000000e+00 : f32
    %41 = vector.broadcast %cst_35 : f32 to vector<8x128xf32>
    %42 = arith.maximumf %40, %41 : vector<8x128xf32>
    %c0_36 = arith.constant 0 : index
    %c0_37 = arith.constant 0 : index
    %43 = vector.load %arg14[%c0_36, %c0_37] : memref<128x784xf32, #tpu.memory_space<vmem>>, vector<128x784xf32>
    %cst_38 = arith.constant dense<0.000000e+00> : vector<8x784xf32>
    %44 = tpu.matmul %42, %43, %cst_38 {dimension_numbers = #tpu.dot_dimension_numbers<[1], [0], [0], [1], [0, 0, 1, 1], [], []>} : vector<8x128xf32>, vector<128x784xf32>, vector<8x784xf32> -> vector<8x784xf32>
    %c0_39 = arith.constant 0 : index
    %c0_40 = arith.constant 0 : index
    %45 = vector.load %arg15[%c0_39, %c0_40] : memref<1x784xf32, #tpu.memory_space<vmem>>, vector<1x784xf32>
    %46 = vector.broadcast %45 : vector<1x784xf32> to vector<8x784xf32>
    %47 = arith.addf %44, %46 : vector<8x784xf32>
    %48 = math.tanh %47 : vector<8x784xf32>
    %c0_41 = arith.constant 0 : index
    %c0_42 = arith.constant 0 : index
    %49 = vector.load %arg16[%c0_41, %c0_42] : memref<8x784xf32, #tpu.memory_space<vmem>>, vector<8x784xf32>
    tpu.vector_store %arg16[%c0_41, %c0_42], %48 {strides = array<i32>} : memref<8x784xf32, #tpu.memory_space<vmem>>, vector<8x784xf32>,
    return
  }
  func.func @transform_0(%arg0: i32) -> (i32, i32) {
    %c0_i32 = arith.constant 0 : i32
    %c0_i32_0 = arith.constant 0 : i32
    return %arg0, %c0_i32 : i32, i32
  }
  func.func @transform_1(%arg0: i32) -> (i32, i32) {
    %c0_i32 = arith.constant 0 : i32
    %c0_i32_0 = arith.constant 0 : i32
    %c0_i32_1 = arith.constant 0 : i32
    return %c0_i32, %c0_i32_0 : i32, i32
  }
  func.func @transform_2(%arg0: i32) -> (i32, i32) {
    %c0_i32 = arith.constant 0 : i32
    %c0_i32_0 = arith.constant 0 : i32
    %c0_i32_1 = arith.constant 0 : i32
    return %c0_i32, %c0_i32_0 : i32, i32
  }
  func.func @transform_3(%arg0: i32) -> (i32, i32) {
    %c0_i32 = arith.constant 0 : i32
    %c0_i32_0 = arith.constant 0 : i32
    %c0_i32_1 = arith.constant 0 : i32
    return %c0_i32, %c0_i32_0 : i32, i32
  }
  func.func @transform_4(%arg0: i32) -> (i32, i32) {
    %c0_i32 = arith.constant 0 : i32
    %c0_i32_0 = arith.constant 0 : i32
    %c0_i32_1 = arith.constant 0 : i32
    return %c0_i32, %c0_i32_0 : i32, i32
  }
  func.func @transform_5(%arg0: i32) -> (i32, i32) {
    %c0_i32 = arith.constant 0 : i32
    %c0_i32_0 = arith.constant 0 : i32
    %c0_i32_1 = arith.constant 0 : i32
    return %c0_i32, %c0_i32_0 : i32, i32
  }
  func.func @transform_6(%arg0: i32) -> (i32, i32) {
    %c0_i32 = arith.constant 0 : i32
    %c0_i32_0 = arith.constant 0 : i32
    %c0_i32_1 = arith.constant 0 : i32
    return %c0_i32, %c0_i32_0 : i32, i32
  }
  func.func @transform_7(%arg0: i32) -> (i32, i32) {
    %c0_i32 = arith.constant 0 : i32
    %c0_i32_0 = arith.constant 0 : i32
    %c0_i32_1 = arith.constant 0 : i32
    return %c0_i32, %c0_i32_0 : i32, i32
  }
  func.func @transform_8(%arg0: i32) -> (i32, i32) {
    %c0_i32 = arith.constant 0 : i32
    %c0_i32_0 = arith.constant 0 : i32
    %c0_i32_1 = arith.constant 0 : i32
    return %c0_i32, %c0_i32_0 : i32, i32
  }
  func.func @transform_9(%arg0: i32) -> (i32, i32) {
    %c0_i32 = arith.constant 0 : i32
    %c0_i32_0 = arith.constant 0 : i32
    %c0_i32_1 = arith.constant 0 : i32
    return %c0_i32, %c0_i32_0 : i32, i32
  }
  func.func @transform_10(%arg0: i32) -> (i32, i32) {
    %c0_i32 = arith.constant 0 : i32
    %c0_i32_0 = arith.constant 0 : i32
    %c0_i32_1 = arith.constant 0 : i32
    return %c0_i32, %c0_i32_0 : i32, i32
  }
  func.func @transform_11(%arg0: i32) -> (i32, i32) {
    %c0_i32 = arith.constant 0 : i32
    %c0_i32_0 = arith.constant 0 : i32
    %c0_i32_1 = arith.constant 0 : i32
    return %c0_i32, %c0_i32_0 : i32, i32
  }
  func.func @transform_12(%arg0: i32) -> (i32, i32) {
    %c0_i32 = arith.constant 0 : i32
    %c0_i32_0 = arith.constant 0 : i32
    %c0_i32_1 = arith.constant 0 : i32
    return %c0_i32, %c0_i32_0 : i32, i32
  }
  func.func @transform_13(%arg0: i32) -> (i32, i32) {
    %c0_i32 = arith.constant 0 : i32
    %c0_i32_0 = arith.constant 0 : i32
    %c0_i32_1 = arith.constant 0 : i32
    return %c0_i32, %c0_i32_0 : i32, i32
  }
  func.func @transform_14(%arg0: i32) -> (i32, i32) {
    %c0_i32 = arith.constant 0 : i32
    %c0_i32_0 = arith.constant 0 : i32
    %c0_i32_1 = arith.constant 0 : i32
    return %c0_i32, %c0_i32_0 : i32, i32
  }
  func.func @transform_15(%arg0: i32) -> (i32, i32) {
    %c0_i32 = arith.constant 0 : i32
    %c0_i32_0 = arith.constant 0 : i32
    return %arg0, %c0_i32 : i32, i32
  }
}

</mosaic_0001>

<bundles_post_ra>
// kernel: ae_mnist_forward.1
= control target key start
LH: loop header
LB: loop body
LE: loop exit
PB: predicated region body
PF: predicated region fallthrough
CT: control target
= control target key end

     0   :  { %20 = vsyncpa [#allocation3], 0  ;;  %v2175_v51 = vmov 1983009808   ;;  %v179_v53 = vlaneseq  ;;  %vm2177_vm0 = vmmov 0   ;;  %vm249_vm1 = vcmask 130048   ;;  %s3140_s0 = inlined_call_operand.vmem [shape: f32[2,784], index: 0, kind: input, shape index: {}]   ;;  %s3141_s1 = inlined_call_operand.vmem [shape: f32[784,128], index: 1, kind: input, shape index: {}]   ;;  %s3142_s2 = inlined_call_operand.vmem [shape: f32[1,128], index: 2, kind: input, shape index: {}]   ;;  %s3143_s3 = inlined_call_operand.vmem [shape: f32[128,64], index: 3, kind: input, shape index: {}]   ;;  %s3144_s4 = inlined_call_operand.vmem [shape: f32[1,64], index: 4, kind: input, shape index: {}]   ;;  %s3145_s5 = inlined_call_operand.vmem [shape: f32[64,12], index: 5, kind: input, shape index: {}]   ;;  %s3146_s6 = inlined_call_operand.vmem [shape: f32[1,12], index: 6, kind: input, shape index: {}]   ;;  %s3147_s7 = inlined_call_operand.vmem [shape: f32[12,12], index: 7, kind: input, shape index: {}]   ;;  %s3148_s8 = inlined_call_operand.vmem [shape: f32[1,12], index: 8, kind: input, shape index: {}]   ;;  %s3149_s9 = inlined_call_operand.vmem [shape: f32[12,64], index: 9, kind: input, shape index: {}]   ;;  %s3150_s10 = inlined_call_operand.vmem [shape: f32[1,64], index: 10, kind: input, shape index: {}]   ;;  %s3151_s11 = inlined_call_operand.vmem [shape: f32[64,128], index: 11, kind: input, shape index: {}]   ;;  %s3152_s12 = inlined_call_operand.vmem [shape: f32[1,128], index: 12, kind: input, shape index: {}]   ;;  %s3153_s13 = inlined_call_operand.vmem [shape: f32[128,784], index: 13, kind: input, shape index: {}]   ;;  %s3154_s14 = inlined_call_operand.vmem [shape: f32[1,784], index: 14, kind: input, shape index: {}]   ;;  %s3155_s15 = inlined_call_operand.hbm [shape: f32[2,784], index: 15, kind: output, shape index: {}]  }
   0x1   :  { %v75_v0 = vld [vmem:[%s3141_s1 + $0x80] sm:$0xff]  ;;  %v76_v1 = vld [vmem:[%s3141_s1 + $0x88] sm:$0xff]  ;;  %v77_v12 = vld [vmem:[%s3141_s1 + $0x90] sm:$0xff]  ;;  %v177_v52 = vunpack.c.l.s4 %v2175_v51  ;;  %vm642_vm2 = vcmask 523264   ;;  %vm730_vm3 = vcmask 1043456   ;;  %vm2179_vm4 = vmmov 1  }
   0x2   :  { %v1842_v2 = vpack.c.bf16 %v76_v1, %v75_v0  ;;  %v59_v3 = vld [vmem:[%s3141_s1] sm:$0xff]  ;;  %v60_v4 = vld [vmem:[%s3141_s1 + $0x8] sm:$0xff]  ;;  %v78_v13 = vld [vmem:[%s3141_s1 + $0x98] sm:$0xff]  ;;  %vm726_vm6 = vcmask 97280   ;;  %vm1506_vm7 = vcmask 1041408   ;;  %vm1507_vm8 = vcmask 1043458  }
   0x3   :  { %v107_v5 = vld [vmem:[%s3141_s1 + $0x180] sm:$0xff]  ;;  %v1844_v6 = vpack.c.bf16 %v60_v4, %v59_v3  ;;  %v108_v7 = vld [vmem:[%s3141_s1 + $0x188] sm:$0xff]  ;;  %v61_v14 = vld [vmem:[%s3141_s1 + $0x10] sm:$0xff]  ;;  %v1846_v15 = vpack.c.bf16 %v78_v13, %v77_v12  ;;  %v2395_v3 = vshrl.u32 %v179_v53, 7  ;;  %vm1509_vm10 = vcmask 128004  }
   0x4   :  { %v91_v8 = vld [vmem:[%s3141_s1 + $0x100] sm:$0xff]  ;;  %v92_v9 = vld [vmem:[%s3141_s1 + $0x108] sm:$0xff]  ;;  %1843 = vmatprep.subr.bf16.mxu0 %v1842_v2  ;;  %v1874_v10 = vpack.c.bf16 %v108_v7, %v107_v5  ;;  %v62_v16 = vld [vmem:[%s3141_s1 + $0x18] sm:$0xff]  ;;  %v178_v2 = vunpack.c.0.s8 %v177_v52 }
   0x5   :  { %v1876_v11 = vpack.c.bf16 %v92_v9, %v91_v8  ;;  %1845 = vmatpush3.bf16.msra.mxu0 %v1844_v6  ;;  %v109_v17 = vld [vmem:[%s3141_s1 + $0x190] sm:$0xff]  ;;  %v110_v18 = vld [vmem:[%s3141_s1 + $0x198] sm:$0xff]  ;;  %v1848_v19 = vpack.c.bf16 %v62_v16, %v61_v14  ;;  %v79_v23 = vld [vmem:[%s3141_s1 + $0xa0] sm:$0xff] }
   0x6   :  { %1875 = vmatprep.subr.bf16.mxu1 %v1874_v10  ;;  %v1878_v20 = vpack.c.bf16 %v110_v18, %v109_v17  ;;  %v93_v21 = vld [vmem:[%s3141_s1 + $0x110] sm:$0xff]  ;;  %v94_v22 = vld [vmem:[%s3141_s1 + $0x118] sm:$0xff]  ;;  %1847 = vmatprep.subr.bf16.mxu0 %v1846_v15  ;;  %v80_v25 = vld [vmem:[%s3141_s1 + $0xa8] sm:$0xff] }
   0x7   :  { %1877 = vmatpush3.bf16.msra.mxu1 %v1876_v11  ;;  %v1880_v24 = vpack.c.bf16 %v94_v22, %v93_v21  ;;  %v63_v26 = vld [vmem:[%s3141_s1 + $0x20] sm:$0xff]  ;;  %v64_v27 = vld [vmem:[%s3141_s1 + $0x28] sm:$0xff]  ;;  %v1850_v28 = vpack.c.bf16 %v80_v25, %v79_v23  ;;  %v81_v35 = vld [vmem:[%s3141_s1 + $0xb0] sm:$0xff] }
   0x8   :  { %1879 = vmatprep.subr.bf16.mxu1 %v1878_v20  ;;  %v111_v29 = vld [vmem:[%s3141_s1 + $0x1a0] sm:$0xff]  ;;  %v112_v30 = vld [vmem:[%s3141_s1 + $0x1a8] sm:$0xff]  ;;  %v1852_v32 = vpack.c.bf16 %v64_v27, %v63_v26  ;;  %v82_v36 = vld [vmem:[%s3141_s1 + $0xb8] sm:$0xff]  ;;  %v2434_v20 = vsub.s32 %v178_v2, %v2395_v3 }
   0x9   :  { %v95_v31 = vld [vmem:[%s3141_s1 + $0x120] sm:$0xff]  ;;  %1849 = vmatpush3.bf16.msra.mxu0 %v1848_v19  ;;  %v1882_v33 = vpack.c.bf16 %v112_v30, %v111_v29  ;;  %v96_v34 = vld [vmem:[%s3141_s1 + $0x128] sm:$0xff]  ;;  %v1854_v37 = vpack.c.bf16 %v82_v36, %v81_v35  ;;  %v65_v38 = vld [vmem:[%s3141_s1 + $0x30] sm:$0xff] }
   0xa   :  { %1851 = vmatprep.subr.bf16.mxu0 %v1850_v28  ;;  %v66_v39 = vld [vmem:[%s3141_s1 + $0x38] sm:$0xff]  ;;  %v113_v40 = vld [vmem:[%s3141_s1 + $0x1b0] sm:$0xff]  ;;  %v1884_v41 = vpack.c.bf16 %v96_v34, %v95_v31  ;;  %v83_v46 = vld [vmem:[%s3141_s1 + $0xc0] sm:$0xff] }
   0xb   :  { %1881 = vmatpush3.bf16.msra.mxu1 %v1880_v24  ;;  %v114_v42 = vld [vmem:[%s3141_s1 + $0x1b8] sm:$0xff]  ;;  %v97_v43 = vld [vmem:[%s3141_s1 + $0x130] sm:$0xff]  ;;  %v84_v47 = vld [vmem:[%s3141_s1 + $0xc8] sm:$0xff]  ;;  %v1856_v48 = vpack.c.bf16 %v66_v39, %v65_v38 }
   0xc   :  { %1883 = vmatprep.subr.bf16.mxu1 %v1882_v33  ;;  %v1886_v44 = vpack.c.bf16 %v114_v42, %v113_v40  ;;  %v98_v45 = vld [vmem:[%s3141_s1 + $0x138] sm:$0xff]  ;;  %v115_v49 = vld [vmem:[%s3141_s1 + $0x1c0] sm:$0xff]  ;;  %v116_v50 = vld [vmem:[%s3141_s1 + $0x1c8] sm:$0xff]  ;;  %v1858_v54 = vpack.c.bf16 %v84_v47, %v83_v46 }
   0xd   :  { %1853 = vmatpush3.bf16.msra.mxu0 %v1852_v32  ;;  %v67_v55 = vld [vmem:[%s3141_s1 + $0x40] sm:$0xff]  ;;  %v68_v56 = vld [vmem:[%s3141_s1 + $0x48] sm:$0xff]  ;;  %v1888_v57 = vpack.c.bf16 %v98_v45, %v97_v43  ;;  %v85_v58 = vld [vmem:[%s3141_s1 + $0xd0] sm:$0xff]  ;;  %v1890_v60 = vpack.c.bf16 %v116_v50, %v115_v49 }
   0xe   :  { %1855 = vmatprep.subr.bf16.mxu0 %v1854_v37  ;;  %v86_v59 = vld [vmem:[%s3141_s1 + $0xd8] sm:$0xff]  ;;  %v99_v61 = vld [vmem:[%s3141_s1 + $0x140] sm:$0xff]  ;;  %v100_v62 = vld [vmem:[%s3141_s1 + $0x148] sm:$0xff]  ;;  %v1860_v63 = vpack.c.bf16 %v68_v56, %v67_v55 }
   0xf   :  { %1885 = vmatpush3.bf16.msra.mxu1 %v1884_v41  ;;  %v117_v0 = vld [vmem:[%s3141_s1 + $0x1d0] sm:$0xff]  ;;  %v118_v1 = vld [vmem:[%s3141_s1 + $0x1d8] sm:$0xff]  ;;  %v1862_v4 = vpack.c.bf16 %v86_v59, %v85_v58  ;;  %v1892_v8 = vpack.c.bf16 %v100_v62, %v99_v61  ;;  %v87_v10 = vld [vmem:[%s3141_s1 + $0xe0] sm:$0xff] }
  0x10   :  { %1887 = vmatprep.subr.bf16.mxu1 %v1886_v44  ;;  %v69_v5 = vld [vmem:[%s3141_s1 + $0x50] sm:$0xff]  ;;  %v70_v6 = vld [vmem:[%s3141_s1 + $0x58] sm:$0xff]  ;;  %v88_v11 = vld [vmem:[%s3141_s1 + $0xe8] sm:$0xff]  ;;  %v1894_v12 = vpack.c.bf16 %v118_v1, %v117_v0 }
  0x11   :  { %1857 = vmatpush3.bf16.msra.mxu0 %v1856_v48  ;;  %v101_v7 = vld [vmem:[%s3141_s1 + $0x150] sm:$0xff]  ;;  %v102_v9 = vld [vmem:[%s3141_s1 + $0x158] sm:$0xff]  ;;  %v71_v13 = vld [vmem:[%s3141_s1 + $0x60] sm:$0xff]  ;;  %v1864_v16 = vpack.c.bf16 %v70_v6, %v69_v5  ;;  %v1866_v21 = vpack.c.bf16 %v88_v11, %v87_v10  ;;  %v2178_v11 = vmov 0.0  }
  0x12   :  { %1859 = vmatprep.subr.bf16.mxu0 %v1858_v54  ;;  %v72_v14 = vld [vmem:[%s3141_s1 + $0x68] sm:$0xff]  ;;  %v119_v15 = vld [vmem:[%s3141_s1 + $0x1e0] sm:$0xff]  ;;  %v89_v18 = vld [vmem:[%s3141_s1 + $0xf0] sm:$0xff]  ;;  %v1896_v22 = vpack.c.bf16 %v102_v9, %v101_v7 }
  0x13   :  { %1889 = vmatpush3.bf16.msra.mxu1 %v1888_v57  ;;  %v120_v17 = vld [vmem:[%s3141_s1 + $0x1e8] sm:$0xff]  ;;  %v90_v19 = vld [vmem:[%s3141_s1 + $0xf8] sm:$0xff]  ;;  %v103_v26 = vld [vmem:[%s3141_s1 + $0x160] sm:$0xff]  ;;  %v1868_v29 = vpack.c.bf16 %v72_v14, %v71_v13 }
  0x14   :  { %1891 = vmatprep.subr.bf16.mxu1 %v1890_v60  ;;  %v2125_v23 = vld [vmem:[%s3140_s0] ss:$14 sps:$4 sm:$0xff]   ;;  %v2127_v24 = vld [vmem:[%s3140_s0 + $0x1c] ss:$14 sps:$4 sm:$0xff]   ;;  %v1898_v25 = vpack.c.bf16 %v120_v17, %v119_v15  ;;  %v2129_v33 = vld [vmem:[%s3140_s0 + $0x4] ss:$14 sps:$4 sm:$0xff]   ;;  %v1870_v35 = vpack.c.bf16 %v90_v19, %v89_v18 }
  0x15   :  { %1861 = vmatpush3.bf16.msra.mxu0 %v1860_v63  ;;  %v104_v27 = vld [vmem:[%s3141_s1 + $0x168] sm:$0xff]  ;;  %v121_v28 = vld [vmem:[%s3141_s1 + $0x1f0] sm:$0xff]  ;;  %v122_v30 = vld [vmem:[%s3141_s1 + $0x1f8] sm:$0xff]  ;;  %v182_v31 = vrot.slane %v2125_v23, %v2434_v20  ;;  %v196_v32 = vrot.slane %v2127_v24, %v2434_v20  ;;  %v189_v42 = vrot.slane %v2129_v33, %v2434_v20  ;;  %v2176_v63 = vmov 0.0|0.0  }
  0x16   :  { %1863 = vmatprep.subr.bf16.mxu0 %v1862_v4  ;;  %v2130_v34 = vld [vmem:[%s3140_s0 + $0x20] ss:$14 sps:$4 sm:$0xff]   ;;  %v74_v37 = vld [vmem:[%s3141_s1 + $0x78] sm:$0xff]  ;;  %v1900_v38 = vpack.c.bf16 %v104_v27, %v103_v26  ;;  %v1902_v44 = vpack.c.bf16 %v122_v30, %v121_v28  ;;  %v2134_v2 = vld [vmem:[%s3140_s0 + $0x24] ss:$14 sps:$4 sm:$0xff]  }
  0x17   :  { %1893 = vmatpush3.bf16.msra.mxu1 %v1892_v8  ;;  %v73_v36 = vld [vmem:[%s3141_s1 + $0x70] sm:$0xff]  ;;  %v205_v39 = vcombine.high %v182_v31, %v196_v32  ;;  %v139_v40 = vld [vmem:[%s3141_s1 + $0x280] sm:$0xff]  ;;  %v140_v41 = vld [vmem:[%s3141_s1 + $0x288] sm:$0xff]  ;;  %v203_v43 = vrot.slane %v2130_v34, %v2434_v20  ;;  %v204_v55 = vcombine.low %v182_v31, %v196_v32  ;;  %v232_v10 = vrot.slane %v2134_v2, %v2434_v20 }
  0x18   :  { %1895 = vmatprep.subr.bf16.mxu1 %v1894_v12  ;;  %v105_v45 = vld [vmem:[%s3141_s1 + $0x170] sm:$0xff]  ;;  %v106_v46 = vld [vmem:[%s3141_s1 + $0x178] sm:$0xff]  ;;  %v1872_v47 = vpack.c.bf16 %v74_v37, %v73_v36  ;;  %v1906_v49 = vpack.c.bf16 %v140_v41, %v139_v40  ;;  %v123_v50 = vld [vmem:[%s3141_s1 + $0x200] sm:$0xff] }
  0x19   :  { %1865 = vmatpush3.bf16.msra.mxu0 %v1864_v16  ;;  %316 = vmatprep.mubr.f32.mxu0 %v205_v39  ;;  %v207_v48 = vcombine.high %v189_v42, %v203_v43  ;;  %v124_v51 = vld [vmem:[%s3141_s1 + $0x208] sm:$0xff]  ;;  %v1904_v52 = vpack.c.bf16 %v106_v46, %v105_v45  ;;  %v141_v53 = vld [vmem:[%s3141_s1 + $0x290] sm:$0xff]  ;;  %v142_v54 = vld [vmem:[%s3141_s1 + $0x298] sm:$0xff]  ;;  %v206_v57 = vcombine.low %v189_v42, %v203_v43 }
  0x1a   :  { %1867 = vmatprep.subr.bf16.mxu0 %v1866_v21  ;;  %v1908_v56 = vpack.c.bf16 %v124_v51, %v123_v50  ;;  %v1910_v58 = vpack.c.bf16 %v142_v54, %v141_v53  ;;  %v125_v59 = vld [vmem:[%s3141_s1 + $0x210] sm:$0xff]  ;;  %v126_v60 = vld [vmem:[%s3141_s1 + $0x218] sm:$0xff]  ;;  %v143_v61 = vld [vmem:[%s3141_s1 + $0x2a0] sm:$0xff] }
  0x1b   :  { %1897 = vmatpush3.bf16.msra.mxu1 %v1896_v22  ;;  %386 = vmatprep.mubr.f32.mxu1 %v207_v48  ;;  %v144_v62 = vld [vmem:[%s3141_s1 + $0x2a8] sm:$0xff]  ;;  %v1912_v0 = vpack.c.bf16 %v126_v60, %v125_v59  ;;  %v127_v5 = vld [vmem:[%s3141_s1 + $0x220] sm:$0xff]  ;;  %v145_v7 = vld [vmem:[%s3141_s1 + $0x2b0] sm:$0xff] }
  0x1c   :  { %1899 = vmatprep.subr.bf16.mxu1 %v1898_v25  ;;  %v2131_v1 = vld [vmem:[%s3140_s0 + $0x8] ss:$14 sps:$4 sm:$0xff]   ;;  %v1914_v4 = vpack.c.bf16 %v144_v62, %v143_v61  ;;  %v147_v17 = vld [vmem:[%s3141_s1 + $0x2c0] sm:$0xff]  ;;  %v2133_v42 = vld [vmem:[%s3140_s0 + $0xc] ss:$14 sps:$4 sm:$0x33]  }
  0x1d   :  { %1869 = vmatpush3.bf16.msra.mxu0 %v1868_v29  ;;  %v128_v6 = vld [vmem:[%s3141_s1 + $0x228] sm:$0xff]  ;;  %v146_v8 = vld [vmem:[%s3141_s1 + $0x2b8] sm:$0xff]  ;;  %v218_v9 = vrot.slane %v2131_v1, %v2434_v20  ;;  %v129_v15 = vld [vmem:[%s3141_s1 + $0x230] sm:$0xff] }
  0x1e   :  { %1871 = vmatprep.subr.bf16.mxu0 %v1870_v35  ;;  %v1916_v12 = vpack.c.bf16 %v128_v6, %v127_v5  ;;  %v1918_v14 = vpack.c.bf16 %v146_v8, %v145_v7  ;;  %v130_v16 = vld [vmem:[%s3141_s1 + $0x238] sm:$0xff]  ;;  %v148_v18 = vld [vmem:[%s3141_s1 + $0x2c8] sm:$0xff]  ;;  %v131_v22 = vld [vmem:[%s3141_s1 + $0x240] sm:$0xff] }
  0x1f   :  { %1901 = vmatpush3.bf16.msra.mxu1 %v1900_v38  ;;  %v241_v13 = vcombine.high %v218_v9, %v232_v10  ;;  %v1920_v19 = vpack.c.bf16 %v130_v16, %v129_v15  ;;  %v1922_v21 = vpack.c.bf16 %v148_v18, %v147_v17  ;;  %v132_v23 = vld [vmem:[%s3141_s1 + $0x248] sm:$0xff]  ;;  %v149_v24 = vld [vmem:[%s3141_s1 + $0x2d0] sm:$0xff]  ;;  %v150_v25 = vld [vmem:[%s3141_s1 + $0x2d8] sm:$0xff] }
  0x20   :  { %1903 = vmatprep.subr.bf16.mxu1 %v1902_v44  ;;  %v1924_v26 = vpack.c.bf16 %v132_v23, %v131_v22  ;;  %v1926_v27 = vpack.c.bf16 %v150_v25, %v149_v24  ;;  %v133_v28 = vld [vmem:[%s3141_s1 + $0x250] sm:$0xff]  ;;  %v134_v29 = vld [vmem:[%s3141_s1 + $0x258] sm:$0xff]  ;;  %v151_v30 = vld [vmem:[%s3141_s1 + $0x2e0] sm:$0xff] }
  0x21   :  { %1873 = vmatpush3.bf16.msra.mxu0 %v1872_v47  ;;  %v152_v31 = vld [vmem:[%s3141_s1 + $0x2e8] sm:$0xff]  ;;  %v1928_v32 = vpack.c.bf16 %v134_v29, %v133_v28  ;;  %v135_v34 = vld [vmem:[%s3141_s1 + $0x260] sm:$0xff]  ;;  %v153_v36 = vld [vmem:[%s3141_s1 + $0x2f0] sm:$0xff]  ;;  %v225_v47 = vrot.slane %v2133_v42, %v2434_v20 }
  0x22   :  { %1907 = vmatprep.subr.bf16.mxu0 %v1906_v49  ;;  %v1930_v33 = vpack.c.bf16 %v152_v31, %v151_v30  ;;  %v136_v35 = vld [vmem:[%s3141_s1 + $0x268] sm:$0xff]  ;;  %v154_v37 = vld [vmem:[%s3141_s1 + $0x2f8] sm:$0xff]  ;;  %v137_v40 = vld [vmem:[%s3141_s1 + $0x270] sm:$0xff]  ;;  %v240_v49 = vcombine.low %v218_v9, %v232_v10 }
  0x23   :  { %1905 = vmatpush3.bf16.msra.mxu1 %v1904_v52  ;;  %v1932_v38 = vpack.c.bf16 %v136_v35, %v135_v34  ;;  %v1934_v39 = vpack.c.bf16 %v154_v37, %v153_v36  ;;  %v138_v41 = vld [vmem:[%s3141_s1 + $0x278] sm:$0xff]  ;;  %v2136_v43 = vld [vmem:[%s3140_s0 + $0x28] ss:$14 sps:$4 sm:$0x33]   ;;  %v155_v45 = vld [vmem:[%s3141_s1 + $0x300] sm:$0xff] }
  0x24   :  { %317 = vmatmul.mubr.f32.vlgmr.msra.gmra.mrb[0].mxu0 %v204_v55  ;;  %1941 = vmatprep.subr.bf16.mxu1 %v2176_v63  ;;  %v1936_v44 = vpack.c.bf16 %v138_v41, %v137_v40  ;;  %v156_v46 = vld [vmem:[%s3141_s1 + $0x308] sm:$0xff]  ;;  %v239_v48 = vrot.slane %v2136_v43, %v2434_v20  ;;  %v533_v52 = vld [vmem:[%s3143_s3] sm:$0xff]  ;;  %v535_v54 = vld [vmem:[%s3143_s3 + $0x10] sm:$0xff] }
  0x25   :  { %1909 = vmatpush3.bf16.msra.mxu0 %v1908_v56  ;;  %456 = vmatprep.mubr.f32.mxu0 %v241_v13  ;;  %v1939_v50 = vpack.c.bf16 %v156_v46, %v155_v45  ;;  %v534_v53 = vld [vmem:[%s3143_s3 + $0x8] sm:$0xff]  ;;  %v536_v56 = vld [vmem:[%s3143_s3 + $0x18] sm:$0xff]  ;;  %v539_v61 = vld [vmem:[%s3143_s3 + $0x30] sm:$0xff] }
  0x26   :  { %387 = vmatmul.mubr.f32.vlgmr.msra.gmra.mrb[0].mxu1 %v206_v57  ;;  %1911 = vmatprep.subr.bf16.mxu0 %v1910_v58  ;;  %v242_v51 = vcombine.low %v225_v47, %v239_v48  ;;  %v1942_v55 = vpack.c.bf16 %v534_v53, %v533_v52  ;;  %v1945_v57 = vpack.c.bf16 %v536_v56, %v535_v54  ;;  %v537_v58 = vld [vmem:[%s3143_s3 + $0x20] sm:$0xff]  ;;  %v538_v59 = vld [vmem:[%s3143_s3 + $0x28] sm:$0xff]  ;;  %v540_v62 = vld [vmem:[%s3143_s3 + $0x38] sm:$0xff] }
  0x27   :  { %1752 = vmatprep.mubr.msk.f32.mxu1 %vm2177_vm0, %v2178_v11  ;;  %v1948_v60 = vpack.c.bf16 %v538_v59, %v537_v58  ;;  %v541_v1 = vld [vmem:[%s3143_s3 + $0x40] sm:$0xff]  ;;  %v542_v2 = vld [vmem:[%s3143_s3 + $0x48] sm:$0xff]  ;;  %v543_v5 = vld [vmem:[%s3143_s3 + $0x50] sm:$0xff] }
  0x28   :  { %1943 = vmatpush3.bf16.msra.mxu1 %v1942_v55  ;;  %v544_v6 = vld [vmem:[%s3143_s3 + $0x58] sm:$0xff]  ;;  %v545_v8 = vld [vmem:[%s3143_s3 + $0x60] sm:$0xff]  ;;  %v546_v9 = vld [vmem:[%s3143_s3 + $0x68] sm:$0xff] }
  0x29   :  { %1913 = vmatpush3.bf16.msra.mxu0 %v1912_v0  ;;  %1944 = vmatprep.subr.bf16.mxu1 %v2176_v63  ;;  %v1951_v0 = vpack.c.bf16 %v540_v62, %v539_v61  ;;  %v1957_v7 = vpack.c.bf16 %v544_v6, %v543_v5  ;;  %v1960_v10 = vpack.c.bf16 %v546_v9, %v545_v8  ;;  %v548_v13 = vld [vmem:[%s3143_s3 + $0x78] sm:$0xff]  ;;  %v627_v15 = vld [vmem:[%s3145_s5] sm:$0xff]  ;;  %v628_v16 = vld [vmem:[%s3145_s5 + $0x8] sm:$0xff] }
  0x2a   :  { %1915 = vmatprep.subr.bf16.mxu0 %v1914_v4  ;;  %v1954_v4 = vpack.c.bf16 %v542_v2, %v541_v1  ;;  %v629_v17 = vld [vmem:[%s3145_s5 + $0x10] sm:$0xff]  ;;  %v1966_v18 = vpack.c.bf16 %v628_v16, %v627_v15  ;;  %v631_v22 = vld [vmem:[%s3145_s5 + $0x20] sm:$0xff]  ;;  %v632_v23 = vld [vmem:[%s3145_s5 + $0x28] sm:$0xff] }
  0x2b   :  { %v1972_v24 = vpack.c.bf16 %v632_v23, %v631_v22  ;;  %v633_v42 = vld [vmem:[%s3145_s5 + $0x30] sm:$0xff]  ;;  %v634_v43 = vld [vmem:[%s3145_s5 + $0x38] sm:$0xff]  ;;  %v1536_v45 = vld [vmem:[%s3144_s4] ss:$0 sm:$0xff] }
  0x2c   :  { %1946 = vmatpush3.bf16.msra.mxu1 %v1945_v57  ;;  %vm1979_vm5 = vmpackc.low %vm730_vm3, %vm2179_vm4  ;;  %v1537_v53 = vld [vmem:[%s3146_s6] ss:$0 sm:$0xff]  ;;  %v806_v59 = vld [vmem:[%s3149_s9 + $0x8] sm:$0xf] }
  0x2d   :  { %1917 = vmatpush3.bf16.msra.mxu0 %v1916_v12  ;;  %1947 = vmatprep.subr.bf16.mxu1 %v2176_v63  ;;  %v547_v12 = vld [vmem:[%s3143_s3 + $0x70] sm:$0xff]  ;;  %v805_v58 = vld [vmem:[%s3149_s9] sm:$0xff]  ;;  %v894_v8 = vld [vmem:[%s3151_s11 + $0x18] sm:$0xff] }
  0x2e   :  { %1919 = vmatprep.subr.bf16.mxu0 %v1918_v14  ;;  %v1963_v14 = vpack.c.bf16 %v548_v13, %v547_v12  ;;  %v1539_v61 = vld [vmem:[%s3148_s8] ss:$0 sm:$0xff]  ;;  %v896_v12 = vld [vmem:[%s3151_s11 + $0x28] sm:$0xff]  ;;  %v898_v15 = vld [vmem:[%s3151_s11 + $0x38] sm:$0xff] }
  0x2f   :  { %v891_v62 = vld [vmem:[%s3151_s11] sm:$0xff]  ;;  %v990_v22 = vld [vmem:[%s3153_s13 + $0x50] sm:$0xff]  ;;  %vm1508_vm9 = vmor %vm1507_vm8, %vm1506_vm7 }
  0x30   :  { %1949 = vmatpush3.bf16.msra.mxu1 %v1948_v60  ;;  %v1982_v60 = vpack.c.bf16 %v806_v59, %v805_v58  ;;  %v980_v23 = vld [vmem:[%s3153_s13] sm:$0xff]  ;;  %vm1510_vm11 = vmor %vm1509_vm10, %vm1508_vm9 }
  0x31   :  { %1921 = vmatpush3.bf16.msra.mxu0 %v1920_v19  ;;  %1950 = vmatprep.subr.bf16.mxu1 %v2176_v63  ;;  %v630_v19 = vld [vmem:[%s3145_s5 + $0x18] sm:$0xff]  ;;  %v1072_v58 = vld [vmem:[%s3153_s13 + $0x2e0] sm:$0xff] }
  0x32   :  { %1923 = vmatprep.subr.bf16.mxu0 %v1922_v21  ;;  %v1969_v21 = vpack.c.bf16 %v630_v19, %v629_v17  ;;  %v981_v17 = vld [vmem:[%s3153_s13 + $0x8] sm:$0xff]  ;;  %v983_v19 = vld [vmem:[%s3153_s13 + $0x18] sm:$0xff] }
  0x34   :  { %1952 = vmatpush3.bf16.msra.mxu1 %v1951_v0  ;;  %v892_v0 = vld [vmem:[%s3151_s11 + $0x8] sm:$0xff] }
  0x35   :  { %1925 = vmatpush3.bf16.msra.mxu0 %v1924_v26  ;;  %1953 = vmatprep.subr.bf16.mxu1 %v2176_v63  ;;  %v1534_v26 = vld [vmem:[%s3142_s2] ss:$0 sm:$0xff]  ;;  %v1986_v5 = vpack.c.bf16 %v892_v0, %v891_v62 }
  0x36   :  { %1927 = vmatprep.subr.bf16.mxu0 %v1926_v27  ;;  %v1542_v0 = vld [vmem:[%s3150_s10] ss:$0 sm:$0xff] }
  0x38   :  { %1955 = vmatpush3.bf16.msra.mxu1 %v1954_v4 }
  0x39   :  { %1929 = vmatpush3.bf16.msra.mxu0 %v1928_v32  ;;  %1956 = vmatprep.subr.bf16.mxu1 %v2176_v63 }
  0x3a   :  { %1931 = vmatprep.subr.bf16.mxu0 %v1930_v33 }
  0x3c   :  { %1958 = vmatpush3.bf16.msra.mxu1 %v1957_v7  ;;  %v893_v7 = vld [vmem:[%s3151_s11 + $0x10] sm:$0xff] }
  0x3d   :  { %1933 = vmatpush3.bf16.msra.mxu0 %v1932_v38  ;;  %1959 = vmatprep.subr.bf16.mxu1 %v2176_v63  ;;  %v1989_v9 = vpack.c.bf16 %v894_v8, %v893_v7 }
  0x3e   :  { %1935 = vmatprep.subr.bf16.mxu0 %v1934_v39 }
  0x40   :  { %1961 = vmatpush3.bf16.msra.mxu1 %v1960_v10  ;;  %v895_v10 = vld [vmem:[%s3151_s11 + $0x20] sm:$0xff] }
  0x41   :  { %1937 = vmatpush3.bf16.msra.mxu0 %v1936_v44  ;;  %1962 = vmatprep.subr.bf16.mxu1 %v2176_v63  ;;  %v1975_v44 = vpack.c.bf16 %v634_v43, %v633_v42  ;;  %v1992_v13 = vpack.c.bf16 %v896_v12, %v895_v10  ;;  %v1022_v42 = vld [vmem:[%s3153_s13 + $0x150] sm:$0xff]  ;;  %v1029_v43 = vld [vmem:[%s3153_s13 + $0x188] sm:$0xff] }
  0x42   :  { %1938 = vmatprep.subr.bf16.mxu0 %v2176_v63 }
  0x44   :  { %457 = vmatmul.mubr.f32.vlgmr.msra.gmra.mrb[2].mxu0 %v240_v49  ;;  %1964 = vmatpush3.bf16.msra.mxu1 %v1963_v14  ;;  %v897_v14 = vld [vmem:[%s3151_s11 + $0x30] sm:$0xff] }
  0x45   :  { %1940 = vmatpush3.bf16.msra.mxu0 %v1939_v50  ;;  %1717 = vmatprep.mubr.msk.f32.mxu0 %vm2177_vm0, %v2178_v11  ;;  %v717_v50 = vld [vmem:[%s3147_s7] sm:$0xff]  ;;  %v1995_v16 = vpack.c.bf16 %v898_v15, %v897_v14  ;;  %v1003_v14 = vld [vmem:[%s3153_s13 + $0xb8] sm:$0xff] }
  0x46   :  { %1965 = vmatprep.subr.bf16.mxu0 %v2176_v63  ;;  %1977 = vmatprep.subr.bf16.mxu1 %v2176_v63  ;;  %v1011_v15 = vld [vmem:[%s3153_s13 + $0xf8] sm:$0xff] }
  0x48   :  { %1718 = vmatmul.mubr.msk.f32.vlgmr.msra.gmra.mrb[4].mxu0 %vm249_vm1, %v242_v51  ;;  %v718_v51 = vld [vmem:[%s3147_s7 + $0x8] sm:$0xf] }
  0x49   :  { %1771 = vmatprep.mubr.msk.f32.mxu0 %vm2177_vm0, %v2178_v11  ;;  %1967 = vmatpush3.bf16.msra.mxu0 %v1966_v18  ;;  %v1978_v52 = vpack.c.bf16 %v718_v51, %v717_v50  ;;  %v988_v18 = vld [vmem:[%s3153_s13 + $0x40] sm:$0xff]  ;;  %v1051_v51 = vld [vmem:[%s3153_s13 + $0x238] sm:$0xff] }
  0x4a   :  { %1968 = vmatprep.subr.bf16.mxu0 %v2176_v63 }
  0x4d   :  { %1970 = vmatpush3.bf16.msra.mxu0 %v1969_v21  ;;  %v1997_v21 = vpack.c.bf16 %v988_v18, %v981_v17 }
  0x4e   :  { %1971 = vmatprep.subr.bf16.mxu0 %v2176_v63 }
  0x51   :  { %1973 = vmatpush3.bf16.msra.mxu0 %v1972_v24  ;;  %v987_v24 = vld [vmem:[%s3153_s13 + $0x38] sm:$0xff] }
  0x52   :  { %1974 = vmatprep.subr.bf16.mxu0 %v2176_v63 }
  0x55   :  { %1976 = vmatpush3.bf16.msra.mxu0 %v1975_v44  ;;  %v2011_v44 = vpack.c.bf16 %v1029_v43, %v1022_v42 }
  0x56   :  { %1998 = vmatprep.subr.bf16.mxu0 %v1997_v21  ;;  %v1017_v21 = vld [vmem:[%s3153_s13 + $0x128] sm:$0xff] }
  0xf7   :  { %v1579_v25 = vpop.f32.mrb[0].mxu0 }
  0xf8   :  { %v1580_v27 = vpop.f32.mrb[1].mxu0 }
  0xf9   :  { %v1581_v28 = vadd.f32 %v1580_v27, %v1579_v25  ;;  %v1614_v29 = vpop.f32.mrb[0].mxu1  ;;  %v2029_v25 = vpack.c.bf16 %v990_v22, %v983_v19  ;;  %v995_v27 = vld [vmem:[%s3153_s13 + $0x78] sm:$0xff]  ;;  %v1010_v19 = vld [vmem:[%s3153_s13 + $0xf0] sm:$0xff]  ;;  %v1025_v22 = vld [vmem:[%s3153_s13 + $0x168] sm:$0xff] }
  0xfa   :  { %v1615_v30 = vpop.f32.mrb[1].mxu1 }
  0xfb   :  { %v319_v31 = vadd.f32 %v1581_v28, %v1534_v26  ;;  %v1616_v32 = vadd.f32 %v1615_v30, %v1614_v29  ;;  %v1999_v26 = vpack.c.bf16 %v987_v24, %v980_v23  ;;  %v1002_v28 = vld [vmem:[%s3153_s13 + $0xb0] sm:$0xff]  ;;  %v1032_v23 = vld [vmem:[%s3153_s13 + $0x1a0] sm:$0xff]  ;;  %v2039_v24 = vpack.c.bf16 %v1017_v21, %v1010_v19  ;;  %v1013_v19 = vld [vmem:[%s3153_s13 + $0x108] sm:$0xff] }
  0xfc   :  { %v2001_v29 = vpack.c.bf16 %v1002_v28, %v995_v27  ;;  %v994_v30 = vld [vmem:[%s3153_s13 + $0x70] sm:$0xff]  ;;  %v1031_v27 = vld [vmem:[%s3153_s13 + $0x198] sm:$0xff]  ;;  %v1020_v21 = vld [vmem:[%s3153_s13 + $0x140] sm:$0xff] }
  0xfd   :  { %v389_v33 = vadd.f32 %v1616_v32, %v319_v31  ;;  %v1001_v31 = vld [vmem:[%s3153_s13 + $0xa8] sm:$0xff]  ;;  %v1039_v28 = vld [vmem:[%s3153_s13 + $0x1d8] sm:$0xff] }
  0xfe   :  { %v2003_v32 = vpack.c.bf16 %v1001_v31, %v994_v30 }
 0x117   :  { %v1649_v34 = vpop.f32.mrb[2].mxu0 }
 0x118   :  { %v1650_v35 = vpop.f32.mrb[3].mxu0 }
 0x119   :  { %v1651_v36 = vadd.f32 %v1650_v35, %v1649_v34  ;;  %v1016_v34 = vld [vmem:[%s3153_s13 + $0x120] sm:$0xff] }
 0x11b   :  { %v459_v37 = vadd.f32 %v1651_v36, %v389_v33  ;;  %v528_v38 = vpop.f32.mrb[4].mxu0  ;;  %v1009_v33 = vld [vmem:[%s3153_s13 + $0xe8] sm:$0xff]  ;;  %v1008_v36 = vld [vmem:[%s3153_s13 + $0xe0] sm:$0xff] }
 0x11c   :  { %v1719_v39 = vpop.f32.mrb[5].mxu0  ;;  %v2005_v35 = vpack.c.bf16 %v1016_v34, %v1009_v33  ;;  %v1045_v33 = vld [vmem:[%s3153_s13 + $0x208] sm:$0xff] }
 0x11d   :  { %v529_v40 = vadd.f32 %v528_v38, %v459_v37  ;;  %v1015_v37 = vld [vmem:[%s3153_s13 + $0x118] sm:$0xff]  ;;  %v1053_v34 = vld [vmem:[%s3153_s13 + $0x248] sm:$0xff] }
 0x11e   :  { %v2007_v38 = vpack.c.bf16 %v1015_v37, %v1008_v36  ;;  %v1023_v39 = vld [vmem:[%s3153_s13 + $0x158] sm:$0xff] }
 0x11f   :  { %v532_v41 = vmax.f32 %v529_v40, 0.0  ;;  %v1030_v40 = vld [vmem:[%s3153_s13 + $0x190] sm:$0xff] }
 0x121   :  { %1753 = vmatmul.mubr.f32.vlgmr.msra.gmra.mrb[2].mxu1 %v532_v41  ;;  %v2009_v41 = vpack.c.bf16 %v1030_v40, %v1023_v39  ;;  %v1059_v39 = vld [vmem:[%s3153_s13 + $0x278] sm:$0xff] }
 0x122   :  { %1778 = vmatprep.mubr.msk.f32.mxu1 %vm2177_vm0, %v2178_v11  ;;  %1980 = vmatpush3.bf16.msk.msra.mxu1 %vm1979_vm5, %v1978_v52  ;;  %v1058_v52 = vld [vmem:[%s3153_s13 + $0x270] sm:$0xff]  ;;  %v1067_v40 = vld [vmem:[%s3153_s13 + $0x2b8] sm:$0xff] }
 0x123   :  { %1981 = vmatprep.subr.bf16.mxu1 %v2176_v63 }
 0x1f4   :  { %v622_v46 = vpop.f32.mrb[2].mxu1 }
 0x1f5   :  { %v623_v47 = vadd.f32 %v1536_v45, %v622_v46  ;;  %v1754_v48 = vpop.f32.mrb[3].mxu1  ;;  %v1037_v45 = vld [vmem:[%s3153_s13 + $0x1c8] sm:$0xff]  ;;  %v1044_v46 = vld [vmem:[%s3153_s13 + $0x200] sm:$0xff] }
 0x1f6   :  { %v1036_v48 = vld [vmem:[%s3153_s13 + $0x1c0] sm:$0xff] }
 0x1f7   :  { %v626_v49 = vmax.f32 %v623_v47, 0.0  ;;  %v2013_v47 = vpack.c.bf16 %v1044_v46, %v1037_v45  ;;  %v1073_v45 = vld [vmem:[%s3153_s13 + $0x2e8] sm:$0xff] }
 0x1f9   :  { %1772 = vmatmul.mubr.msk.f32.vlgmr.msra.gmra.mrb[6].mxu0 %vm642_vm2, %v626_v49  ;;  %v1043_v49 = vld [vmem:[%s3153_s13 + $0x1f8] sm:$0xff] }
 0x1fa   :  { %1193 = vmatprep.mubr.f32.mxu0 %v2178_v11  ;;  %2000 = vmatpush1.bf16.msra.mxu0 %v1999_v26  ;;  %v2015_v50 = vpack.c.bf16 %v1043_v49, %v1036_v48  ;;  %v1024_v26 = vld [vmem:[%s3153_s13 + $0x160] sm:$0xff]  ;;  %v1086_v48 = vld [vmem:[%s3153_s13 + $0x350] sm:$0xff]  ;;  %v1081_v49 = vld [vmem:[%s3153_s13 + $0x328] sm:$0xff] }
 0x1fb   :  { %2002 = vmatprep.subr.bf16.mxu0 %v2001_v29  ;;  %v1046_v29 = vld [vmem:[%s3153_s13 + $0x210] sm:$0xff]  ;;  %v2043_v30 = vpack.c.bf16 %v1031_v27, %v1024_v26  ;;  %v1019_v26 = vld [vmem:[%s3153_s13 + $0x138] sm:$0xff] }
 0x1fc   :  { %v2045_v31 = vpack.c.bf16 %v1046_v29, %v1039_v28  ;;  %v1014_v27 = vld [vmem:[%s3153_s13 + $0x110] sm:$0xff]  ;;  %v1021_v28 = vld [vmem:[%s3153_s13 + $0x148] sm:$0xff]  ;;  %v1027_v29 = vld [vmem:[%s3153_s13 + $0x178] sm:$0xff] }
 0x1fe   :  { %2004 = vmatpush1.bf16.msra.mxu0 %v2003_v32  ;;  %v1038_v32 = vld [vmem:[%s3153_s13 + $0x1d0] sm:$0xff] }
 0x1ff   :  { %2006 = vmatprep.subr.bf16.mxu0 %v2005_v35  ;;  %v1060_v35 = vld [vmem:[%s3153_s13 + $0x280] sm:$0xff]  ;;  %v2047_v36 = vpack.c.bf16 %v1045_v33, %v1038_v32  ;;  %v2100_v32 = vpack.c.bf16 %v1021_v28, %v1014_v27  ;;  %v1026_v33 = vld [vmem:[%s3153_s13 + $0x170] sm:$0xff] }
 0x200   :  { %v2049_v37 = vpack.c.bf16 %v1060_v35, %v1053_v34  ;;  %v1033_v35 = vld [vmem:[%s3153_s13 + $0x1a8] sm:$0xff] }
 0x202   :  { %2008 = vmatpush1.bf16.msra.mxu0 %v2007_v38  ;;  %v1052_v38 = vld [vmem:[%s3153_s13 + $0x240] sm:$0xff] }
 0x203   :  { %2010 = vmatprep.subr.bf16.mxu0 %v2009_v41  ;;  %v1074_v41 = vld [vmem:[%s3153_s13 + $0x2f0] sm:$0xff]  ;;  %v2051_v42 = vpack.c.bf16 %v1059_v39, %v1052_v38  ;;  %v1048_v38 = vld [vmem:[%s3153_s13 + $0x220] sm:$0xff]  ;;  %v2075_v39 = vpack.c.bf16 %v1033_v35, %v1026_v33 }
 0x204   :  { %v2053_v43 = vpack.c.bf16 %v1074_v41, %v1067_v40  ;;  %v1040_v41 = vld [vmem:[%s3153_s13 + $0x1e0] sm:$0xff] }
 0x206   :  { %2012 = vmatpush1.bf16.msra.mxu0 %v2011_v44  ;;  %v1066_v44 = vld [vmem:[%s3153_s13 + $0x2b0] sm:$0xff] }
 0x207   :  { %2014 = vmatprep.subr.bf16.mxu0 %v2013_v47  ;;  %v2055_v46 = vpack.c.bf16 %v1073_v45, %v1066_v44  ;;  %v1079_v47 = vld [vmem:[%s3153_s13 + $0x318] sm:$0xff]  ;;  %v1042_v44 = vld [vmem:[%s3153_s13 + $0x1f0] sm:$0xff]  ;;  %v1049_v45 = vld [vmem:[%s3153_s13 + $0x228] sm:$0xff] }
 0x20a   :  { %2016 = vmatpush1.bf16.msra.mxu0 %v2015_v50  ;;  %v2025_v50 = vpack.c.bf16 %v1086_v48, %v1079_v47  ;;  %v1062_v47 = vld [vmem:[%s3153_s13 + $0x290] sm:$0xff] }
 0x2cc   :  { %v712_v54 = vpop.f32.mrb[6].mxu0 }
 0x2cd   :  { %v713_v55 = vadd.f32 %v1537_v53, %v712_v54  ;;  %v1773_v56 = vpop.f32.mrb[7].mxu0  ;;  %v2017_v53 = vpack.c.bf16 %v1058_v52, %v1051_v51  ;;  %v1050_v54 = vld [vmem:[%s3153_s13 + $0x230] sm:$0xff]  ;;  %v1088_v51 = vld [vmem:[%s3153_s13 + $0x360] sm:$0xff] }
 0x2ce   :  { %v1078_v52 = vld [vmem:[%s3153_s13 + $0x310] sm:$0xff] }
 0x2cf   :  { %v716_v57 = vmax.f32 %v713_v55, 0.0  ;;  %v1057_v55 = vld [vmem:[%s3153_s13 + $0x268] sm:$0xff]  ;;  %2018 = vmatprep.subr.bf16.mxu0 %v2017_v53 }
 0x2d0   :  { %v2019_v56 = vpack.c.bf16 %v1057_v55, %v1050_v54  ;;  %v1085_v53 = vld [vmem:[%s3153_s13 + $0x348] sm:$0xff]  ;;  %v2057_v54 = vpack.c.bf16 %v1088_v51, %v1081_v49  ;;  %v2106_v49 = vpack.c.bf16 %v1049_v45, %v1042_v44 }
 0x2d1   :  { %1779 = vmatmul.mubr.msk.f32.vlgmr.msra.gmra.mrb[4].mxu1 %vm726_vm6, %v716_v57  ;;  %v1065_v57 = vld [vmem:[%s3153_s13 + $0x2a8] sm:$0xff]  ;;  %v2027_v55 = vpack.c.bf16 %v1085_v53, %v1078_v52  ;;  %v1056_v53 = vld [vmem:[%s3153_s13 + $0x260] sm:$0xff] }
 0x2d2   :  { %1785 = vmatprep.mubr.msk.f32.mxu1 %vm2177_vm0, %v2178_v11  ;;  %1984 = vmatpush3.bf16.msk.msra.mxu1 %vm1979_vm5, %v1982_v60  ;;  %v2021_v59 = vpack.c.bf16 %v1072_v58, %v1065_v57  ;;  %v1064_v60 = vld [vmem:[%s3153_s13 + $0x2a0] sm:$0xff]  ;;  %v1087_v57 = vld [vmem:[%s3153_s13 + $0x358] sm:$0xff]  ;;  %v1061_v52 = vld [vmem:[%s3153_s13 + $0x288] sm:$0xff] }
 0x2d3   :  { %1985 = vmatprep.subr.bf16.mxu1 %v2176_v63  ;;  %2020 = vmatpush1.bf16.msra.mxu0 %v2019_v56  ;;  %v1080_v56 = vld [vmem:[%s3153_s13 + $0x320] sm:$0xff] }
 0x2d4   :  { %2022 = vmatprep.subr.bf16.mxu0 %v2021_v59  ;;  %v2059_v58 = vpack.c.bf16 %v1087_v57, %v1080_v56  ;;  %v985_v59 = vld [vmem:[%s3153_s13 + $0x28] sm:$0xff]  ;;  %v1076_v56 = vld [vmem:[%s3153_s13 + $0x300] sm:$0xff] }
 0x3a4   :  { %v800_v1 = vpop.f32.mrb[4].mxu1 }
 0x3a5   :  { %v801_v2 = vadd.f32 %v1539_v61, %v800_v1  ;;  %v1780_v4 = vpop.f32.mrb[5].mxu1  ;;  %v1071_v61 = vld [vmem:[%s3153_s13 + $0x2d8] sm:$0xff]  ;;  %v982_v1 = vld [vmem:[%s3153_s13 + $0x10] sm:$0xff] }
 0x3a6   :  { %v2023_v62 = vpack.c.bf16 %v1071_v61, %v1064_v60  ;;  %v992_v60 = vld [vmem:[%s3153_s13 + $0x60] sm:$0xff] }
 0x3a7   :  { %v804_v6 = vmax.f32 %v801_v2, 0.0  ;;  %v989_v2 = vld [vmem:[%s3153_s13 + $0x48] sm:$0xff]  ;;  %v2061_v61 = vpack.c.bf16 %v992_v60, %v985_v59  ;;  %v1068_v59 = vld [vmem:[%s3153_s13 + $0x2c0] sm:$0xff] }
 0x3a8   :  { %2024 = vmatpush1.bf16.msra.mxu0 %v2023_v62  ;;  %v1545_v62 = vld [vmem:[%s3152_s12] ss:$0 sm:$0xff] }
 0x3a9   :  { %1786 = vmatmul.mubr.msk.f32.vlgmr.msra.gmra.mrb[6].mxu1 %vm726_vm6, %v804_v6  ;;  %v1004_v6 = vld [vmem:[%s3153_s13 + $0xc0] sm:$0xff]  ;;  %2026 = vmatprep.subr.bf16.mxu0 %v2025_v50  ;;  %v1054_v50 = vld [vmem:[%s3153_s13 + $0x250] sm:$0xff] }
 0x3aa   :  { %1987 = vmatpush3.bf16.msra.mxu1 %v1986_v5  ;;  %1804 = vmatprep.mubr.msk.f32.mxu1 %vm2177_vm0, %v2178_v11  ;;  %v997_v5 = vld [vmem:[%s3153_s13 + $0x88] sm:$0xff]  ;;  %v2083_v57 = vpack.c.bf16 %v1061_v52, %v1054_v50 }
 0x3ab   :  { %1988 = vmatprep.subr.bf16.mxu1 %v2176_v63  ;;  %v2033_v12 = vpack.c.bf16 %v1004_v6, %v997_v5  ;;  %v999_v6 = vld [vmem:[%s3153_s13 + $0x98] sm:$0xff] }
 0x3ac   :  { %2028 = vmatpush1.bf16.msra.mxu0 %v2027_v55  ;;  %v1069_v55 = vld [vmem:[%s3153_s13 + $0x2c8] sm:$0xff] }
 0x3ad   :  { %2062 = vmatprep.subr.bf16.mxu0 %v2061_v61  ;;  %v2085_v60 = vpack.c.bf16 %v1076_v56, %v1069_v55  ;;  %v1075_v61 = vld [vmem:[%s3153_s13 + $0x2f8] sm:$0xff] }
 0x3ae   :  { %1990 = vmatpush3.bf16.msra.mxu1 %v1989_v9  ;;  %v2031_v9 = vpack.c.bf16 %v989_v2, %v982_v1  ;;  %v991_v1 = vld [vmem:[%s3153_s13 + $0x58] sm:$0xff]  ;;  %v986_v2 = vld [vmem:[%s3153_s13 + $0x30] sm:$0xff] }
 0x3af   :  { %1991 = vmatprep.subr.bf16.mxu1 %v2176_v63 }
 0x3b2   :  { %1993 = vmatpush3.bf16.msra.mxu1 %v1992_v13  ;;  %v996_v13 = vld [vmem:[%s3153_s13 + $0x80] sm:$0xff] }
 0x3b3   :  { %1994 = vmatprep.subr.bf16.mxu1 %v2176_v63  ;;  %v2035_v17 = vpack.c.bf16 %v1003_v14, %v996_v13  ;;  %v998_v13 = vld [vmem:[%s3153_s13 + $0x90] sm:$0xff] }
 0x3b6   :  { %1996 = vmatpush3.bf16.msra.mxu1 %v1995_v16  ;;  %v1018_v16 = vld [vmem:[%s3153_s13 + $0x130] sm:$0xff] }
 0x3b7   :  { %2030 = vmatprep.subr.bf16.mxu1 %v2029_v25  ;;  %v2037_v18 = vpack.c.bf16 %v1018_v16, %v1011_v15  ;;  %v2041_v25 = vpack.c.bf16 %v1032_v23, %v1025_v22  ;;  %v1005_v16 = vld [vmem:[%s3153_s13 + $0xc8] sm:$0xff] }
 0x3b8   :  { %v2067_v22 = vpack.c.bf16 %v1005_v16, %v998_v13  ;;  %v1104_v16 = vsub.s32 2, %v2395_v3 }
 0x47c   :  { %v886_v4 = vpop.f32.mrb[6].mxu1 }
 0x47d   :  { %v887_v7 = vadd.f32 %v1542_v0, %v886_v4  ;;  %v1787_v8 = vpop.f32.mrb[7].mxu1  ;;  %v984_v0 = vld [vmem:[%s3153_s13 + $0x20] sm:$0xff]  ;;  %v993_v4 = vld [vmem:[%s3153_s13 + $0x68] sm:$0xff] }
 0x47f   :  { %v890_v10 = vmax.f32 %v887_v7, 0.0  ;;  %v1006_v7 = vld [vmem:[%s3153_s13 + $0xd0] sm:$0xff] }
 0x480   :  { %v2065_v15 = vpack.c.bf16 %v1006_v7, %v999_v6  ;;  %v1082_v6 = vld [vmem:[%s3153_s13 + $0x330] sm:$0xff] }
 0x481   :  { %1805 = vmatmul.mubr.msk.f32.vlgmr.msra.gmra.mrb[8].mxu1 %vm642_vm2, %v890_v10  ;;  %v2063_v10 = vpack.c.bf16 %v991_v1, %v984_v0  ;;  %v1077_v0 = vld [vmem:[%s3153_s13 + $0x308] sm:$0xff]  ;;  %v1083_v1 = vld [vmem:[%s3153_s13 + $0x338] sm:$0xff] }
 0x482   :  { %2032 = vmatpush1.bf16.msra.mxu1 %v2031_v9  ;;  %1264 = vmatprep.mubr.f32.mxu1 %v2178_v11 }
 0x483   :  { %2034 = vmatprep.subr.bf16.mxu1 %v2033_v12  ;;  %v2094_v12 = vpack.c.bf16 %v993_v4, %v986_v2  ;;  %v1090_v2 = vld [vmem:[%s3153_s13 + $0x370] sm:$0xff]  ;;  %v2087_v4 = vpack.c.bf16 %v1075_v61, %v1068_v59 }
 0x484   :  { %v2089_v7 = vpack.c.bf16 %v1090_v2, %v1083_v1 }
 0x486   :  { %2036 = vmatpush1.bf16.msra.mxu1 %v2035_v17  ;;  %v1000_v17 = vld [vmem:[%s3153_s13 + $0xa0] sm:$0xff] }
 0x487   :  { %2038 = vmatprep.subr.bf16.mxu1 %v2037_v18  ;;  %v1007_v18 = vld [vmem:[%s3153_s13 + $0xd8] sm:$0xff] }
 0x488   :  { %v2097_v23 = vpack.c.bf16 %v1007_v18, %v1000_v17  ;;  %v1092_v17 = vld [vmem:[%s3154_s14] sm:$0x7f]  ;;  %v1100_v18 = vsub.s32 1, %v2395_v3 }
 0x48a   :  { %2040 = vmatpush1.bf16.msra.mxu1 %v2039_v24  ;;  %v1012_v24 = vld [vmem:[%s3153_s13 + $0x100] sm:$0xff] }
 0x48b   :  { %2042 = vmatprep.subr.bf16.mxu1 %v2041_v25  ;;  %v2069_v25 = vpack.c.bf16 %v1020_v21, %v1013_v19  ;;  %v1108_v19 = vsub.s32 3, %v2395_v3 }
 0x48e   :  { %2044 = vmatpush1.bf16.msra.mxu1 %v2043_v30  ;;  %v1034_v30 = vld [vmem:[%s3153_s13 + $0x1b0] sm:$0xff] }
 0x48f   :  { %2046 = vmatprep.subr.bf16.mxu1 %v2045_v31  ;;  %v2071_v31 = vpack.c.bf16 %v1019_v26, %v1012_v24  ;;  %v2073_v34 = vpack.c.bf16 %v1034_v30, %v1027_v29 }
 0x492   :  { %2048 = vmatpush1.bf16.msra.mxu1 %v2047_v36  ;;  %v1035_v36 = vld [vmem:[%s3153_s13 + $0x1b8] sm:$0xff] }
 0x493   :  { %2050 = vmatprep.subr.bf16.mxu1 %v2049_v37  ;;  %v1041_v37 = vld [vmem:[%s3153_s13 + $0x1e8] sm:$0xff] }
 0x496   :  { %2052 = vmatpush1.bf16.msra.mxu1 %v2051_v42  ;;  %v2077_v42 = vpack.c.bf16 %v1048_v38, %v1041_v37 }
 0x497   :  { %2054 = vmatprep.subr.bf16.mxu1 %v2053_v43  ;;  %v1047_v43 = vld [vmem:[%s3153_s13 + $0x218] sm:$0xff] }
 0x498   :  { %v2079_v48 = vpack.c.bf16 %v1047_v43, %v1040_v41 }
 0x49a   :  { %2056 = vmatpush1.bf16.msra.mxu1 %v2055_v46  ;;  %v1055_v46 = vld [vmem:[%s3153_s13 + $0x258] sm:$0xff] }
 0x49b   :  { %2058 = vmatprep.subr.bf16.mxu1 %v2057_v54  ;;  %v2081_v51 = vpack.c.bf16 %v1062_v47, %v1055_v46  ;;  %v1063_v54 = vld [vmem:[%s3153_s13 + $0x298] sm:$0xff]  ;;  %v1112_v46 = vsub.s32 4, %v2395_v3  ;;  %v1120_v47 = vsub.s32 6, %v2395_v3 }
 0x49d   :  { %v1121_v50 = vrot.slane %v1092_v17, %v1120_v47 }
 0x49e   :  { %2060 = vmatpush1.bf16.msra.mxu1 %v2059_v58  ;;  %v2109_v58 = vpack.c.bf16 %v1063_v54, %v1056_v53 }
 0x49f   :  { %2093 = vmatprep.subr.bf16.mxu1 %v2176_v63 }
 0x554   :  { %v975_v5 = vpop.f32.mrb[8].mxu1 }
 0x555   :  { %v976_v8 = vadd.f32 %v1545_v62, %v975_v5  ;;  %v1806_v9 = vpop.f32.mrb[9].mxu1  ;;  %v1070_v62 = vld [vmem:[%s3153_s13 + $0x2d0] sm:$0xff] }
 0x556   :  { %v2112_v5 = vpack.c.bf16 %v1077_v0, %v1070_v62  ;;  %v1084_v9 = vld [vmem:[%s3153_s13 + $0x340] sm:$0xff] }
 0x557   :  { %v2977_v14 = vmax.f32 %v976_v8, 0.0  ;;  %v1089_v8 = vld [vmem:[%s3153_s13 + $0x368] sm:$0xff] }
 0x559   :  { %1194 = vmatmul.mubr.f32.vlgmr.msra.gmra.mrb[8].mxu0 %v2977_v14  ;;  %1265 = vmatmul.mubr.f32.vlgmr.msra.gmra.mrb[10].mxu1 %v2977_v14 }
 0x55a   :  { %2064 = vmatpush1.bf16.msra.mxu0 %v2063_v10  ;;  %2095 = vmatpush3.bf16.msra.mxu1 %v2094_v12  ;;  %v1091_v10 = vld [vmem:[%s3153_s13 + $0x378] sm:$0xff]  ;;  %v2091_v12 = vpack.c.bf16 %v1089_v8, %v1082_v6 }
 0x55b   :  { %2066 = vmatprep.subr.bf16.mxu0 %v2065_v15  ;;  %2096 = vmatprep.subr.bf16.mxu1 %v2176_v63  ;;  %v2115_v13 = vpack.c.bf16 %v1091_v10, %v1084_v9  ;;  %v1096_v15 = vsub.s32 0, %v2395_v3 }
 0x55c   :  { %1335 = vmatprep.mubr.f32.mxu0 %v2178_v11  ;;  %1839 = vmatprep.mubr.msk.f32.mxu1 %vm2177_vm0, %v2178_v11  ;;  %v1028_v11 = vld [vmem:[%s3153_s13 + $0x180] sm:$0xff] }
 0x55d   :  { %v2103_v40 = vpack.c.bf16 %v1035_v36, %v1028_v11  ;;  %v1097_v21 = vrot.slane %v1092_v17, %v1096_v15 }
 0x55e   :  { %2068 = vmatpush1.bf16.msra.mxu0 %v2067_v22  ;;  %2098 = vmatpush3.bf16.msra.mxu1 %v2097_v23  ;;  %v1101_v22 = vrot.slane %v1092_v17, %v1100_v18  ;;  %v1109_v23 = vrot.slane %v1092_v17, %v1108_v19 }
 0x55f   :  { %2070 = vmatprep.subr.bf16.mxu0 %v2069_v25  ;;  %2099 = vmatprep.subr.bf16.mxu1 %v2176_v63 }
 0x562   :  { %2072 = vmatpush1.bf16.msra.mxu0 %v2071_v31  ;;  %2101 = vmatpush3.bf16.msra.mxu1 %v2100_v32 }
 0x563   :  { %2074 = vmatprep.subr.bf16.mxu0 %v2073_v34  ;;  %2102 = vmatprep.subr.bf16.mxu1 %v2176_v63 }
 0x566   :  { %2076 = vmatpush1.bf16.msra.mxu0 %v2075_v39  ;;  %2104 = vmatpush3.bf16.msra.mxu1 %v2103_v40 }
 0x567   :  { %2078 = vmatprep.subr.bf16.mxu0 %v2077_v42  ;;  %2105 = vmatprep.subr.bf16.mxu1 %v2176_v63 }
 0x56a   :  { %2080 = vmatpush1.bf16.msra.mxu0 %v2079_v48  ;;  %2107 = vmatpush3.bf16.msra.mxu1 %v2106_v49  ;;  %v1116_v48 = vsub.s32 5, %v2395_v3  ;;  %v1113_v49 = vrot.slane %v1092_v17, %v1112_v46 }
 0x56b   :  { %2082 = vmatprep.subr.bf16.mxu0 %v2081_v51  ;;  %2108 = vmatprep.subr.bf16.mxu1 %v2176_v63 }
 0x56c   :  { %v1117_v51 = vrot.slane %v1092_v17, %v1116_v48 }
 0x56e   :  { %2084 = vmatpush1.bf16.msra.mxu0 %v2083_v57  ;;  %2110 = vmatpush3.bf16.msra.mxu1 %v2109_v58 }
 0x56f   :  { %2086 = vmatprep.subr.bf16.mxu0 %v2085_v60  ;;  %2111 = vmatprep.subr.bf16.mxu1 %v2176_v63 }
 0x572   :  { %2088 = vmatpush1.bf16.msra.mxu0 %v2087_v4  ;;  %2113 = vmatpush3.bf16.msra.mxu1 %v2112_v5 }
 0x573   :  { %2090 = vmatprep.subr.bf16.mxu0 %v2089_v7  ;;  %2114 = vmatprep.subr.bf16.mxu1 %v2176_v63  ;;  %v1105_v63 = vrot.slane %v1092_v17, %v1104_v16 }
 0x576   :  { %2092 = vmatpush1.bf16.msra.mxu0 %v2091_v12  ;;  %2116 = vmatpush3.bf16.msra.mxu1 %v2115_v13 }
 0x579   :  { %1336 = vmatmul.mubr.f32.vlgmr.msra.gmra.mrb[10].mxu0 %v2977_v14  ;;  %1840 = vmatmul.mubr.f32.vlgmr.msra.gmra.mrb[12].mxu1 %v2977_v14 }
 0x62c   :  { %v1195_v24 = vpop.f32.mrb[8].mxu0  ;;  %v1266_v25 = vpop.f32.mrb[10].mxu1 }
 0x62d   :  { %v1196_v26 = vadd.f32 %v1195_v24, %v1097_v21  ;;  %v1267_v14 = vadd.f32 %v1266_v25, %v1105_v63  ;;  %v1197_v27 = vpop.f32.mrb[9].mxu0  ;;  %v1268_v28 = vpop.f32.mrb[11].mxu1 }
 0x62e   :  { %v1198_v29 = vadd.f32 %v1197_v27, %v1101_v22  ;;  %v1269_v30 = vadd.f32 %v1268_v28, %v1109_v23 }
 0x62f   :  { %2137 = vtanh.f32 %v1196_v26 }
 0x630   :  { %2139 = vtanh.f32 %v1267_v14 }
 0x631   :  { %2141 = vtanh.f32 %v1198_v29 }
 0x632   :  { %2143 = vtanh.f32 %v1269_v30 }
 0x639   :  { %v2138_v31 = vpop.eup %2137 }
 0x63a   :  { %v2140_v32 = vpop.eup %2139 }
 0x63b   :  { %v2142_v33 = vpop.eup %2141 }
 0x63c   :  { %v2144_v34 = vpop.eup %2143  ;;  %v1426_v35 = vcombine.low %v2138_v31, %v2142_v33  ;;  %v1427_v11 = vcombine.high %v2138_v31, %v2142_v33 }
 0x63d   :  { %v1428_v36 = vcombine.low %v2140_v32, %v2144_v34  ;;  %v1429_v37 = vcombine.high %v2140_v32, %v2144_v34 }
 0x63e   :  { %v1436_v38 = vrot.slane %v1426_v35, %v2434_v20  ;;  %v1443_v39 = vrot.slane %v1427_v11, %v2434_v20 }
 0x63f   :  { %v1450_v40 = vrot.slane %v1428_v36, %v2434_v20  ;;  %v1457_v41 = vrot.slane %v1429_v37, %v2434_v20 }
 0x641   :  { %v1458_v42 = vcombine.low %v1436_v38, %v1450_v40  ;;  %v1459_v43 = vcombine.high %v1436_v38, %v1450_v40  ;;  %v1460_v44 = vcombine.low %v1443_v39, %v1457_v41  ;;  %v1461_v45 = vcombine.high %v1443_v39, %v1457_v41 }
 0x643   :  { %1505 = vst [vmem:[#allocation2] sm:$0xff] %v1458_v42  ;;  %1512 = vst [vmem:[#allocation2 + $0xe] sm:$0xff] %v1459_v43 }
 0x644   :  { %1514 = vst [vmem:[#allocation2 + $0x1c] sm:$0xff] %v1460_v44  ;;  %1516 = vst [vmem:[#allocation2 + $0x2a] sm:$0xff] %v1461_v45 }
 0x64c   :  { %v1337_v52 = vpop.f32.mrb[10].mxu0  ;;  %v1408_v53 = vpop.f32.mrb[12].mxu1 }
 0x64d   :  { %v1338_v54 = vadd.f32 %v1337_v52, %v1113_v49  ;;  %v1409_v55 = vadd.f32 %v1408_v53, %v1121_v50  ;;  %v1339_v56 = vpop.f32.mrb[11].mxu0  ;;  %v1841_v57 = vpop.f32.mrb[13].mxu1 }
 0x64e   :  { %v1340_v58 = vadd.f32 %v1339_v56, %v1117_v51 }
 0x64f   :  { %2145 = vtanh.f32 %v1338_v54 }
 0x650   :  { %2147 = vtanh.f32 %v1409_v55 }
 0x651   :  { %2149 = vtanh.f32 %v1340_v58 }
 0x659   :  { %v2146_v59 = vpop.eup %2145 }
 0x65a   :  { %v2148_v60 = vpop.eup %2147 }
 0x65b   :  { %v2150_v61 = vpop.eup %2149  ;;  %v1464_v62 = vcombine.high %v2148_v60, %v2148_v60  ;;  %v1485_v2 = vrot.slane %v2148_v60, %v2434_v20 }
 0x65c   :  { %v1462_v3 = vcombine.low %v2146_v59, %v2150_v61  ;;  %v1463_v0 = vcombine.high %v2146_v59, %v2150_v61 }
 0x65d   :  { %v1492_v1 = vrot.slane %v1464_v62, %v2434_v20 }
 0x65e   :  { %v1471_v4 = vrot.slane %v1462_v3, %v2434_v20  ;;  %v1478_v5 = vrot.slane %v1463_v0, %v2434_v20 }
 0x660   :  { %v1493_v6 = vcombine.low %v1471_v4, %v1485_v2  ;;  %v1494_v7 = vcombine.high %v1471_v4, %v1485_v2  ;;  %v1495_v8 = vcombine.low %v1478_v5, %v1492_v1  ;;  %v1496_v9 = vcombine.high %v1478_v5, %v1492_v1 }
 0x662   :  { %1511 = vst.msk [vmem:[#allocation2 + $0x8] sm:$0x3f] %vm1510_vm11, %v1493_v6  ;;  %1513 = vst.msk [vmem:[#allocation2 + $0x16] sm:$0x3f] %vm1510_vm11, %v1494_v7 }
 0x663   :  { %1515 = vst.msk [vmem:[#allocation2 + $0x24] sm:$0x3f] %vm1510_vm11, %v1495_v8  ;;  %1517 = vst.msk [vmem:[#allocation2 + $0x32] sm:$0x3f] %vm1510_vm11, %v1496_v9 }
 0x664   :  { %1522 = vsyncadd [#allocation3], 672  ;;  %s2180_s13 = smov [#allocation2]  }
 0x665   :  { %s1523_s14 = sshll.u32 %s2180_s13, 4  ;;  %s1524_s14 = int_to_ptr.vmem [resolvable:$true] %s1523_s14 }
 0x666   :  { %s2151_s12 = scalar_lea.vmem %s1524_s14, 224  ;;  %s2155_s27 = scalar_lea.vmem %s1524_s14, 896 }
 0x667   :  { %p2152_p0 = scmp.ne.s32.totalorder %s1524_s14, %s2151_s12  ;;  %p2156_p1 = scmp.lt.s32.totalorder %s1524_s14, %s1524_s14 }
 0x668   :  { %p2157_p2 = scmp.lt.s32.totalorder %s2155_s27, %s2151_s12 }
 0x66a   :  { %p2158_p3 = por %p2157_p2, %p2156_p1 }
 0x66c   :  { %p2159_p4 = pnand %p2158_p3, %p2152_p0 }
 0x66e   :  { %2162 = shalt.err (!%p2159_p4)
}
 0x66f   :  { %s2163_s2 = scalar_lea.hbm %s3155_s15, 224 }
 0x670   :  { %p2164_p5 = scmp.ne.s32.totalorder %s3155_s15, %s2163_s2  ;;  %p2167_p6 = scmp.lt.u32.totalorder %s2163_s2, %s3155_s15 }
 0x672   :  { %p2169_p7 = pnand %p2167_p6, %p2164_p5 }
 0x674   :  { %2172 = shalt.err (!%p2169_p7)
}
 0x675   :  { %s2181_s16 = smov 224   ;;  %s2182_s17 = smov 14  }
 0x676   :  { %1529 = dma.vmem_to_hbm [thread:$0]  %s1524_s14, 224, %s3155_s15, [#allocation3], %s2181_s16, %s2181_s16, %s2182_s17  }
 0x677   :  { %2173 = dma.done.wait [#allocation3], 896  }
 0x678   :  { %2174 = vsyncadd [#allocation3], 4294966400 }
 0x679   :  { %1533 = vsyncpa [#allocation3], 1 }

</bundles_post_ra>
